<compile_context>
chip_gen: v5e
topology: v5e:2x2
jax: 0.10.0
libtpu: 0.0.40
codegen_flags: <defaults>
</compile_context>

<pallas_src>
import functools

import jax
import jax.numpy as jnp
from jax import lax
from jax.experimental import pallas as pl
from jax.experimental.pallas import tpu as pltpu


# ---------------------------------------------------------------------------
# Fused kernel: QKV projection + flash attention + gamma*out + residual
# ---------------------------------------------------------------------------
def _self_attn_kernel(x_ref, wq_ref, bq_ref, wk_ref, bk_ref, wv_ref, bv_ref,
                      gamma_ref, o_ref, k_sc, v_sc, m_sc, l_sc, acc_sc,
                      *, n_valid, tq, tk):
    qi = pl.program_id(1)
    n_pad = v_sc.shape[1]
    nk = n_pad // tk

    # ---- once per image (qi == 0): project K, V into VMEM-resident scratch ----
    @pl.when(qi == 0)
    def _project_kv():
        xb = x_ref[0].astype(jnp.bfloat16)                            # (C, Np)
        k = jnp.dot(wk_ref[...], xb,
                    preferred_element_type=jnp.float32) + bk_ref[...]
        v = jnp.dot(wv_ref[...], xb,
                    preferred_element_type=jnp.float32) + bv_ref[...]
        k_sc[...] = k.astype(jnp.bfloat16)                            # (C8, Np)
        v_sc[...] = v.astype(jnp.bfloat16)                            # (C,  Np)

    # ---- query / residual tile (sliced from the VMEM-resident x block) -------
    def x_tile():
        if tq == n_pad:                                               # static
            return x_ref[0]
        off = pl.multiple_of(pl.program_id(1) * tq, tq)
        return x_ref[0, :, pl.ds(off, tq)]                            # (C, tq)

    # ---- project this query tile (channel-major, canonical MXU matmul) -------
    q = (jnp.dot(wq_ref[...], x_tile().astype(jnp.bfloat16),
                 preferred_element_type=jnp.float32)
         + bq_ref[...]).astype(jnp.bfloat16)                          # (C8, tq)

    # ---- online softmax over the VMEM-resident key/value tiles ---------------
    m_sc[...] = jnp.full(m_sc.shape, -jnp.inf, dtype=m_sc.dtype)
    l_sc[...] = jnp.zeros(l_sc.shape, dtype=l_sc.dtype)
    acc_sc[...] = jnp.zeros(acc_sc.shape, dtype=acc_sc.dtype)

    def kv_step(kt, carry):
        if nk == 1:                                                   # static
            k_off = 0
            k_t = k_sc[...]                                           # (C8, tk)
            v_t = v_sc[...]                                           # (C,  tk)
        else:
            k_off = pl.multiple_of(kt * tk, tk)
            k_t = k_sc[:, pl.ds(k_off, tk)]
            v_t = v_sc[:, pl.ds(k_off, tk)]

        # s[n, m] = sum_c k[c, n] * q[c, m]   (A^T.B, MXU-native, no relayout)
        s = lax.dot_general(k_t, q, (((0,), (0,)), ((), ())),
                            preferred_element_type=jnp.float32)       # (tk, tq)
        if n_valid < n_pad:                                           # static
            pos = k_off + lax.broadcasted_iota(jnp.int32, (tk, tq), 0)
            s = jnp.where(pos < n_valid, s, -1e30)

        m_prev = m_sc[...]                                            # (1, tq)
        m_new = jnp.maximum(m_prev, jnp.max(s, axis=0, keepdims=True))
        alpha = jnp.exp(m_prev - m_new)
        p = jnp.exp(s - m_new)                                        # (tk, tq)
        l_sc[...] = alpha * l_sc[...] + jnp.sum(p, axis=0, keepdims=True)
        acc_sc[...] = alpha * acc_sc[...] + jnp.dot(
            v_t, p.astype(jnp.bfloat16), preferred_element_type=jnp.float32)
        m_sc[...] = m_new
        return carry

    if nk == 1:
        kv_step(0, 0)
    else:
        lax.fori_loop(0, nk, kv_step, 0, unroll=nk <= 8)

    # ---- epilogue: normalize, gamma*out + residual, lane-dense store ---------
    inv_l = pl.reciprocal(l_sc[...], approx=True)                     # EUP vrcp
    out = acc_sc[...] * inv_l                                         # (C, tq)
    o_ref[0] = (gamma_ref[0, 0] * out + x_tile()).astype(o_ref.dtype)


# ---------------------------------------------------------------------------
# Host wrapper
# ---------------------------------------------------------------------------
def _round_up(v, m):
    return (v + m - 1) // m * m


def _max_tile():
    # v5e: 128-wide MXU, 1 vst slot, less HBM BW -> 256; v6e/v7x -> 512.
    try:
        kind = jax.devices()[0].device_kind.lower()
    except Exception:
        kind = ""
    return 256 if "v5" in kind else 512


def _pick_tile(n_pad, cap):
    for t in (cap, 256, 128):
        if t <= n_pad and n_pad % t == 0:
            return t
    return n_pad                      # n_pad < 128: single full-extent tile


def _vmem_limit_bytes(C, C8, Np, tq, tk):
    f32, b16 = 4, 2
    Cs, C8s = _round_up(C, 8), _round_up(C8, 8)
    Nl, Cl = _round_up(Np, 128), _round_up(C, 128)
    tql, tkl = _round_up(tq, 128), _round_up(tk, 128)
    est = (2 * Cs * Nl * f32                 # x block (double-buffered)
           + 2 * Cs * tql * f32              # out block (double-buffered)
           + C8s * Nl * b16                  # K scratch (channel-major)
           + Cs * Nl * b16                   # V scratch (channel-major)
           + Cs * tql * f32                  # output accumulator
           + 2 * 8 * tql * f32               # running max / sum
           + 2 * (2 * C8s + Cs) * Cl * b16   # weights (double-buffered)
           + 3 * tkl * tql * f32)            # s / p intermediates
    est = int(est * 1.3) + (2 << 20)
    # Budget against v7x's 64 MiB physical VMEM (typical SAGAN shapes ~<40 MiB).
    return max(16 << 20, min(est, 112 << 20))


def self_attn_forward(x, wq, bq, wk, bk, wv, bv, gamma):
    """x: (B, C, W, H) float32.  Returns (B, C, W, H); matches PyTorch Self_Attn."""
    B, C, W, H = x.shape
    N = W * H
    C8 = wq.shape[0]

    x_cn = x.reshape(B, C, N)                       # channel-major; free reshape

    cap = _max_tile()
    Np = N if N <= 128 else _round_up(N, 128)       # pad so tiles divide evenly
    tq = _pick_tile(Np, cap)
    tk = _pick_tile(Np, cap)
    nq = Np // tq
    if Np != N:
        x_cn = jnp.pad(x_cn, ((0, 0), (0, 0), (0, Np - N)))

    wq_b = wq.astype(jnp.bfloat16)
    wk_b = wk.astype(jnp.bfloat16)
    wv_b = wv.astype(jnp.bfloat16)
    bq2 = bq.reshape(C8, 1).astype(jnp.float32)
    bk2 = bk.reshape(C8, 1).astype(jnp.float32)
    bv2 = bv.reshape(C, 1).astype(jnp.float32)
    gamma2 = jnp.asarray(gamma, jnp.float32).reshape(1, 1)

    kernel = functools.partial(_self_attn_kernel, n_valid=N, tq=tq, tk=tk)

    out_p = pl.pallas_call(
        kernel,
        out_shape=jax.ShapeDtypeStruct((B, C, Np), x.dtype),
        grid=(B, nq),
        in_specs=[
            # Full image, channel-major; block index depends only on b, so it is
            # DMA'd from HBM once per image and stays VMEM-resident across qi.
            pl.BlockSpec((1, C, Np), lambda b, qi: (b, 0, 0)),
            pl.BlockSpec((C8, C), lambda b, qi: (0, 0)),     # wq (bf16)
            pl.BlockSpec((C8, 1), lambda b, qi: (0, 0)),     # bq
            pl.BlockSpec((C8, C), lambda b, qi: (0, 0)),     # wk (bf16)
            pl.BlockSpec((C8, 1), lambda b, qi: (0, 0)),     # bk
            pl.BlockSpec((C, C), lambda b, qi: (0, 0)),      # wv (bf16)
            pl.BlockSpec((C, 1), lambda b, qi: (0, 0)),      # bv
            pl.BlockSpec((1, 1), lambda b, qi: (0, 0),
                         memory_space=pltpu.SMEM),           # gamma
        ],
        out_specs=pl.BlockSpec((1, C, tq), lambda b, qi: (b, 0, qi)),
        scratch_shapes=[
            pltpu.VMEM((C8, Np), jnp.bfloat16),   # K (channel-major, resident)
            pltpu.VMEM((C, Np), jnp.bfloat16),    # V (channel-major, resident)
            pltpu.VMEM((1, tq), jnp.float32),     # running max
            pltpu.VMEM((1, tq), jnp.float32),     # running sum
            pltpu.VMEM((C, tq), jnp.float32),     # output accumulator
        ],
        compiler_params=pltpu.CompilerParams(
            # b is parallel (feeds both v7x TensorCores when B >= 2); qi must
            # stay sequential ("arbitrary") because K/V scratch is filled at
            # qi == 0 and reused for all query tiles of the same image.
            dimension_semantics=("parallel", "arbitrary"),
            vmem_limit_bytes=_vmem_limit_bytes(C, C8, Np, tq, tk)),
    )(x_cn, wq_b, bq2, wk_b, bk2, wv_b, bv2, gamma2)

    out = out_p if Np == N else out_p[:, :, :N]
    return out.reshape(B, C, W, H)


# ---------------------------------------------------------------------------
# Pure-JAX reference (mirrors the PyTorch forward exactly, all f32)
# ---------------------------------------------------------------------------
def self_attn_reference(x, wq, bq, wk, bk, wv, bv, gamma):
    B, C, W, H = x.shape
    N = W * H
    xf = x.reshape(B, C, N)
    q = jnp.einsum('oc,bcn->bon', wq, xf) + bq[None, :, None]   # (B, C8, N)
    k = jnp.einsum('oc,bcn->bon', wk, xf) + bk[None, :, None]   # (B, C8, N)
    v = jnp.einsum('oc,bcn->bon', wv, xf) + bv[None, :, None]   # (B, C,  N)
    energy = jnp.einsum('bcm,bcn->bmn', q, k)                   # (B, N, N)
    attn = jax.nn.softmax(energy, axis=-1)
    out = jnp.einsum('bcn,bmn->bcm', v, attn)                   # (B, C, N)
    out = out.reshape(B, C, W, H)
    return gamma.reshape(()) * out + x


if __name__ == "__main__":
    # Small shapes consistent with the module (in_dim >= 8 so C//8 >= 1).
    B, C, W, H = 2, 16, 8, 8
    C8 = C // 8

    key = jax.random.PRNGKey(0)
    kx, kwq, kbq, kwk, kbk, kwv, kbv = jax.random.split(key, 7)

    x = jax.random.normal(kx, (B, C, W, H), dtype=jnp.float32)

    # Conv2d 1x1 weights squeezed to 2-D; biases 1-D (out_channels,).
    wq = jax.random.normal(kwq, (C8, C), dtype=jnp.float32) * 0.1
    bq = jax.random.normal(kbq, (C8,), dtype=jnp.float32) * 0.1
    wk = jax.random.normal(kwk, (C8, C), dtype=jnp.float32) * 0.1
    bk = jax.random.normal(kbk, (C8,), dtype=jnp.float32) * 0.1
    wv = jax.random.normal(kwv, (C, C), dtype=jnp.float32) * 0.1
    bv = jax.random.normal(kbv, (C,), dtype=jnp.float32) * 0.1
    # Module __init__ sets gamma = 0 (out == x); use nonzero to exercise attention.
    gamma = jnp.array([0.5], dtype=jnp.float32)

    out = self_attn_forward(x, wq, bq, wk, bk, wv, bv, gamma)
    out = jax.block_until_ready(out)

    ref = self_attn_reference(x, wq, bq, wk, bk, wv, bv, gamma)
    assert out.shape == (B, C, W, H)
    # bf16 MXU operands (f32 accumulation) + approx reciprocal -> bf16-level tol.
    assert jnp.allclose(out, ref, atol=2e-2, rtol=2e-2), "mismatch vs reference"

    print("KERNEL_OK")
</pallas_src>

<mosaic_0001>
module attributes {stable_mosaic.version = 11 : i64} {
  func.func @_self_attn_kernel(%arg0: i32, %arg1: i32, %arg2: memref<1x16x64xf32, #tpu.memory_space<vmem>>, %arg3: memref<2x16xbf16, #tpu.memory_space<vmem>>, %arg4: memref<2x1xf32, #tpu.memory_space<vmem>>, %arg5: memref<2x16xbf16, #tpu.memory_space<vmem>>, %arg6: memref<2x1xf32, #tpu.memory_space<vmem>>, %arg7: memref<16x16xbf16, #tpu.memory_space<vmem>>, %arg8: memref<16x1xf32, #tpu.memory_space<vmem>>, %arg9: memref<1x1xf32, #tpu.memory_space<smem>>, %arg10: memref<1x16x64xf32, #tpu.memory_space<vmem>>, %arg11: memref<2x64xbf16, #tpu.memory_space<vmem>>, %arg12: memref<16x64xbf16, #tpu.memory_space<vmem>>, %arg13: memref<1x64xf32, #tpu.memory_space<vmem>>, %arg14: memref<1x64xf32, #tpu.memory_space<vmem>>, %arg15: memref<16x64xf32, #tpu.memory_space<vmem>>) attributes {dimension_semantics = [#tpu.dimension_semantics<parallel>, #tpu.dimension_semantics<arbitrary>], iteration_bounds = array<i64: 2, 1>, scalar_prefetch = 0 : i64, scratch_operands = 5 : i64, tpu.core_type = #tpu.core_type<tc>, window_params = [{transform_indices = @transform_0, window_bounds = array<i64: 1, 16, 64>}, {pipeline_mode = #tpu.pipeline_mode<synchronous>, transform_indices = @transform_1, window_bounds = array<i64: 2, 16>}, {pipeline_mode = #tpu.pipeline_mode<synchronous>, transform_indices = @transform_2, window_bounds = array<i64: 2, 1>}, {pipeline_mode = #tpu.pipeline_mode<synchronous>, transform_indices = @transform_3, window_bounds = array<i64: 2, 16>}, {pipeline_mode = #tpu.pipeline_mode<synchronous>, transform_indices = @transform_4, window_bounds = array<i64: 2, 1>}, {pipeline_mode = #tpu.pipeline_mode<synchronous>, transform_indices = @transform_5, window_bounds = array<i64: 16, 16>}, {pipeline_mode = #tpu.pipeline_mode<synchronous>, transform_indices = @transform_6, window_bounds = array<i64: 16, 1>}, {transform_indices = @transform_7, window_bounds = array<i64: 1, 1>}, {transform_indices = @transform_8, window_bounds = array<i64: 1, 16, 64>}]} {
    %c0_i32 = arith.constant 0 : i32
    %0 = arith.cmpi eq, %arg1, %c0_i32 : i32
    %1 = arith.extui %0 : i1 to i32
    %c0_i32_0 = arith.constant 0 : i32
    %2 = arith.cmpi ne, %1, %c0_i32_0 : i32
    scf.if %2 {
      %c0_48 = arith.constant 0 : index
      %c0_49 = arith.constant 0 : index
      %c0_50 = arith.constant 0 : index
      %58 = vector.load %arg2[%c0_48, %c0_49, %c0_50] : memref<1x16x64xf32, #tpu.memory_space<vmem>>, vector<1x16x64xf32>
      %59 = vector.shape_cast %58 : vector<1x16x64xf32> to vector<16x64xf32>
      %60 = arith.truncf %59 : vector<16x64xf32> to vector<16x64xbf16>
      %c0_51 = arith.constant 0 : index
      %c0_52 = arith.constant 0 : index
      %61 = vector.load %arg5[%c0_51, %c0_52] : memref<2x16xbf16, #tpu.memory_space<vmem>>, vector<2x16xbf16>
      %cst_53 = arith.constant dense<0.000000e+00> : vector<2x64xf32>
      %62 = tpu.matmul %61, %60, %cst_53 {dimension_numbers = #tpu.dot_dimension_numbers<[1], [0], [0], [1], [0, 0, 1, 1], [], []>} : vector<2x16xbf16>, vector<16x64xbf16>, vector<2x64xf32> -> vector<2x64xf32>
      %c0_54 = arith.constant 0 : index
      %c0_55 = arith.constant 0 : index
      %63 = vector.load %arg6[%c0_54, %c0_55] : memref<2x1xf32, #tpu.memory_space<vmem>>, vector<2x1xf32>
      %64 = vector.broadcast %63 : vector<2x1xf32> to vector<2x64xf32>
      %65 = arith.addf %62, %64 : vector<2x64xf32>
      %c0_56 = arith.constant 0 : index
      %c0_57 = arith.constant 0 : index
      %66 = vector.load %arg7[%c0_56, %c0_57] : memref<16x16xbf16, #tpu.memory_space<vmem>>, vector<16x16xbf16>
      %cst_58 = arith.constant dense<0.000000e+00> : vector<16x64xf32>
      %67 = tpu.matmul %66, %60, %cst_58 {dimension_numbers = #tpu.dot_dimension_numbers<[1], [0], [0], [1], [0, 0, 1, 1], [], []>} : vector<16x16xbf16>, vector<16x64xbf16>, vector<16x64xf32> -> vector<16x64xf32>
      %c0_59 = arith.constant 0 : index
      %c0_60 = arith.constant 0 : index
      %68 = vector.load %arg8[%c0_59, %c0_60] : memref<16x1xf32, #tpu.memory_space<vmem>>, vector<16x1xf32>
      %69 = vector.broadcast %68 : vector<16x1xf32> to vector<16x64xf32>
      %70 = arith.addf %67, %69 : vector<16x64xf32>
      %71 = arith.truncf %65 : vector<2x64xf32> to vector<2x64xbf16>
      %c0_61 = arith.constant 0 : index
      %c0_62 = arith.constant 0 : index
      %72 = vector.load %arg11[%c0_61, %c0_62] : memref<2x64xbf16, #tpu.memory_space<vmem>>, vector<2x64xbf16>
      tpu.vector_store %arg11[%c0_61, %c0_62], %71 {strides = array<i32>} : memref<2x64xbf16, #tpu.memory_space<vmem>>, vector<2x64xbf16>,
      %73 = arith.truncf %70 : vector<16x64xf32> to vector<16x64xbf16>
      %c0_63 = arith.constant 0 : index
      %c0_64 = arith.constant 0 : index
      %74 = vector.load %arg12[%c0_63, %c0_64] : memref<16x64xbf16, #tpu.memory_space<vmem>>, vector<16x64xbf16>
      tpu.vector_store %arg12[%c0_63, %c0_64], %73 {strides = array<i32>} : memref<16x64xbf16, #tpu.memory_space<vmem>>, vector<16x64xbf16>,
    } else {
    }
    %c0 = arith.constant 0 : index
    %c0_1 = arith.constant 0 : index
    %3 = vector.load %arg3[%c0, %c0_1] : memref<2x16xbf16, #tpu.memory_space<vmem>>, vector<2x16xbf16>
    %c0_2 = arith.constant 0 : index
    %c0_3 = arith.constant 0 : index
    %c0_4 = arith.constant 0 : index
    %4 = vector.load %arg2[%c0_2, %c0_3, %c0_4] : memref<1x16x64xf32, #tpu.memory_space<vmem>>, vector<1x16x64xf32>
    %5 = vector.shape_cast %4 : vector<1x16x64xf32> to vector<16x64xf32>
    %6 = arith.truncf %5 : vector<16x64xf32> to vector<16x64xbf16>
    %cst = arith.constant dense<0.000000e+00> : vector<2x64xf32>
    %7 = tpu.matmul %3, %6, %cst {dimension_numbers = #tpu.dot_dimension_numbers<[1], [0], [0], [1], [0, 0, 1, 1], [], []>} : vector<2x16xbf16>, vector<16x64xbf16>, vector<2x64xf32> -> vector<2x64xf32>
    %c0_5 = arith.constant 0 : index
    %c0_6 = arith.constant 0 : index
    %8 = vector.load %arg4[%c0_5, %c0_6] : memref<2x1xf32, #tpu.memory_space<vmem>>, vector<2x1xf32>
    %9 = vector.broadcast %8 : vector<2x1xf32> to vector<2x64xf32>
    %10 = arith.addf %7, %9 : vector<2x64xf32>
    %11 = arith.truncf %10 : vector<2x64xf32> to vector<2x64xbf16>
    %cst_7 = arith.constant 0xFF800000 : f32
    %12 = vector.broadcast %cst_7 : f32 to vector<1x64xf32>
    %c0_8 = arith.constant 0 : index
    %c0_9 = arith.constant 0 : index
    %13 = vector.load %arg13[%c0_8, %c0_9] : memref<1x64xf32, #tpu.memory_space<vmem>>, vector<1x64xf32>
    tpu.vector_store %arg13[%c0_8, %c0_9], %12 {strides = array<i32>} : memref<1x64xf32, #tpu.memory_space<vmem>>, vector<1x64xf32>,
    %cst_10 = arith.constant 0.000000e+00 : f32
    %14 = vector.broadcast %cst_10 : f32 to vector<1x64xf32>
    %c0_11 = arith.constant 0 : index
    %c0_12 = arith.constant 0 : index
    %15 = vector.load %arg14[%c0_11, %c0_12] : memref<1x64xf32, #tpu.memory_space<vmem>>, vector<1x64xf32>
    tpu.vector_store %arg14[%c0_11, %c0_12], %14 {strides = array<i32>} : memref<1x64xf32, #tpu.memory_space<vmem>>, vector<1x64xf32>,
    %cst_13 = arith.constant 0.000000e+00 : f32
    %16 = vector.broadcast %cst_13 : f32 to vector<16x64xf32>
    %c0_14 = arith.constant 0 : index
    %c0_15 = arith.constant 0 : index
    %17 = vector.load %arg15[%c0_14, %c0_15] : memref<16x64xf32, #tpu.memory_space<vmem>>, vector<16x64xf32>
    tpu.vector_store %arg15[%c0_14, %c0_15], %16 {strides = array<i32>} : memref<16x64xf32, #tpu.memory_space<vmem>>, vector<16x64xf32>,
    %c0_16 = arith.constant 0 : index
    %c0_17 = arith.constant 0 : index
    %18 = vector.load %arg11[%c0_16, %c0_17] : memref<2x64xbf16, #tpu.memory_space<vmem>>, vector<2x64xbf16>
    %c0_18 = arith.constant 0 : index
    %c0_19 = arith.constant 0 : index
    %19 = vector.load %arg12[%c0_18, %c0_19] : memref<16x64xbf16, #tpu.memory_space<vmem>>, vector<16x64xbf16>
    %cst_20 = arith.constant dense<0.000000e+00> : vector<64x64xf32>
    %20 = tpu.matmul %18, %11, %cst_20 {dimension_numbers = #tpu.dot_dimension_numbers<[0], [0], [1], [1], [0, 1, 1, 1], [], []>} : vector<2x64xbf16>, vector<2x64xbf16>, vector<64x64xf32> -> vector<64x64xf32>
    %c0_21 = arith.constant 0 : index
    %c0_22 = arith.constant 0 : index
    %21 = vector.load %arg13[%c0_21, %c0_22] : memref<1x64xf32, #tpu.memory_space<vmem>>, vector<1x64xf32>
    %cst_23 = arith.constant dense<0xFF800000> : vector<64xf32>
    %22 = vector.multi_reduction <maximumf>, %20, %cst_23 [0] : vector<64x64xf32> to vector<64xf32>
    %23 = vector.shape_cast %22 : vector<64xf32> to vector<1x64xf32>
    %24 = arith.maximumf %21, %23 : vector<1x64xf32>
    %25 = arith.subf %21, %24 : vector<1x64xf32>
    %26 = math.exp %25 : vector<1x64xf32>
    %27 = vector.broadcast %24 : vector<1x64xf32> to vector<64x64xf32>
    %28 = arith.subf %20, %27 : vector<64x64xf32>
    %29 = math.exp %28 : vector<64x64xf32>
    %c0_24 = arith.constant 0 : index
    %c0_25 = arith.constant 0 : index
    %30 = vector.load %arg14[%c0_24, %c0_25] : memref<1x64xf32, #tpu.memory_space<vmem>>, vector<1x64xf32>
    %31 = arith.mulf %26, %30 : vector<1x64xf32>
    %cst_26 = arith.constant dense<0.000000e+00> : vector<64xf32>
    %32 = vector.multi_reduction <add>, %29, %cst_26 [0] : vector<64x64xf32> to vector<64xf32>
    %33 = vector.shape_cast %32 : vector<64xf32> to vector<1x64xf32>
    %34 = arith.addf %31, %33 : vector<1x64xf32>
    %c0_27 = arith.constant 0 : index
    %c0_28 = arith.constant 0 : index
    %35 = vector.load %arg14[%c0_27, %c0_28] : memref<1x64xf32, #tpu.memory_space<vmem>>, vector<1x64xf32>
    tpu.vector_store %arg14[%c0_27, %c0_28], %34 {strides = array<i32>} : memref<1x64xf32, #tpu.memory_space<vmem>>, vector<1x64xf32>,
    %c0_29 = arith.constant 0 : index
    %c0_30 = arith.constant 0 : index
    %36 = vector.load %arg15[%c0_29, %c0_30] : memref<16x64xf32, #tpu.memory_space<vmem>>, vector<16x64xf32>
    %37 = vector.broadcast %26 : vector<1x64xf32> to vector<16x64xf32>
    %38 = arith.mulf %37, %36 : vector<16x64xf32>
    %39 = arith.truncf %29 : vector<64x64xf32> to vector<64x64xbf16>
    %cst_31 = arith.constant dense<0.000000e+00> : vector<16x64xf32>
    %40 = tpu.matmul %19, %39, %cst_31 {dimension_numbers = #tpu.dot_dimension_numbers<[1], [0], [0], [1], [0, 0, 1, 1], [], []>} : vector<16x64xbf16>, vector<64x64xbf16>, vector<16x64xf32> -> vector<16x64xf32>
    %41 = arith.addf %38, %40 : vector<16x64xf32>
    %c0_32 = arith.constant 0 : index
    %c0_33 = arith.constant 0 : index
    %42 = vector.load %arg15[%c0_32, %c0_33] : memref<16x64xf32, #tpu.memory_space<vmem>>, vector<16x64xf32>
    tpu.vector_store %arg15[%c0_32, %c0_33], %41 {strides = array<i32>} : memref<16x64xf32, #tpu.memory_space<vmem>>, vector<16x64xf32>,
    %c0_34 = arith.constant 0 : index
    %c0_35 = arith.constant 0 : index
    %43 = vector.load %arg13[%c0_34, %c0_35] : memref<1x64xf32, #tpu.memory_space<vmem>>, vector<1x64xf32>
    tpu.vector_store %arg13[%c0_34, %c0_35], %24 {strides = array<i32>} : memref<1x64xf32, #tpu.memory_space<vmem>>, vector<1x64xf32>,
    %c0_36 = arith.constant 0 : index
    %c0_37 = arith.constant 0 : index
    %44 = vector.load %arg14[%c0_36, %c0_37] : memref<1x64xf32, #tpu.memory_space<vmem>>, vector<1x64xf32>
    %45 = tpu.reciprocal %44 {approx = true} : vector<1x64xf32> -> vector<1x64xf32>
    %c0_38 = arith.constant 0 : index
    %c0_39 = arith.constant 0 : index
    %46 = vector.load %arg15[%c0_38, %c0_39] : memref<16x64xf32, #tpu.memory_space<vmem>>, vector<16x64xf32>
    %47 = vector.broadcast %45 : vector<1x64xf32> to vector<16x64xf32>
    %48 = arith.mulf %46, %47 : vector<16x64xf32>
    %c0_40 = arith.constant 0 : index
    %c0_41 = arith.constant 0 : index
    %49 = memref.load %arg9[%c0_40, %c0_41] : memref<1x1xf32, #tpu.memory_space<smem>>
    %50 = vector.broadcast %49 : f32 to vector<16x64xf32>
    %51 = arith.mulf %50, %48 : vector<16x64xf32>
    %c0_42 = arith.constant 0 : index
    %c0_43 = arith.constant 0 : index
    %c0_44 = arith.constant 0 : index
    %52 = vector.load %arg2[%c0_42, %c0_43, %c0_44] : memref<1x16x64xf32, #tpu.memory_space<vmem>>, vector<1x16x64xf32>
    %53 = vector.shape_cast %52 : vector<1x16x64xf32> to vector<16x64xf32>
    %54 = arith.addf %51, %53 : vector<16x64xf32>
    %c0_45 = arith.constant 0 : index
    %c0_46 = arith.constant 0 : index
    %c0_47 = arith.constant 0 : index
    %55 = vector.load %arg10[%c0_45, %c0_46, %c0_47] : memref<1x16x64xf32, #tpu.memory_space<vmem>>, vector<1x16x64xf32>
    %56 = vector.shape_cast %55 : vector<1x16x64xf32> to vector<16x64xf32>
    %57 = vector.shape_cast %54 : vector<16x64xf32> to vector<1x16x64xf32>
    tpu.vector_store %arg10[%c0_45, %c0_46, %c0_47], %57 {strides = array<i32>} : memref<1x16x64xf32, #tpu.memory_space<vmem>>, vector<1x16x64xf32>,
    return
  }
  func.func @transform_0(%arg0: i32, %arg1: i32) -> (i32, i32, i32) {
    %c0_i32 = arith.constant 0 : i32
    %c0_i32_0 = arith.constant 0 : i32
    %c0_i32_1 = arith.constant 0 : i32
    return %arg0, %c0_i32, %c0_i32_0 : i32, i32, i32
  }
  func.func @transform_1(%arg0: i32, %arg1: i32) -> (i32, i32) {
    %c0_i32 = arith.constant 0 : i32
    %c0_i32_0 = arith.constant 0 : i32
    %c0_i32_1 = arith.constant 0 : i32
    return %c0_i32, %c0_i32_0 : i32, i32
  }
  func.func @transform_2(%arg0: i32, %arg1: i32) -> (i32, i32) {
    %c0_i32 = arith.constant 0 : i32
    %c0_i32_0 = arith.constant 0 : i32
    %c0_i32_1 = arith.constant 0 : i32
    return %c0_i32, %c0_i32_0 : i32, i32
  }
  func.func @transform_3(%arg0: i32, %arg1: i32) -> (i32, i32) {
    %c0_i32 = arith.constant 0 : i32
    %c0_i32_0 = arith.constant 0 : i32
    %c0_i32_1 = arith.constant 0 : i32
    return %c0_i32, %c0_i32_0 : i32, i32
  }
  func.func @transform_4(%arg0: i32, %arg1: i32) -> (i32, i32) {
    %c0_i32 = arith.constant 0 : i32
    %c0_i32_0 = arith.constant 0 : i32
    %c0_i32_1 = arith.constant 0 : i32
    return %c0_i32, %c0_i32_0 : i32, i32
  }
  func.func @transform_5(%arg0: i32, %arg1: i32) -> (i32, i32) {
    %c0_i32 = arith.constant 0 : i32
    %c0_i32_0 = arith.constant 0 : i32
    %c0_i32_1 = arith.constant 0 : i32
    return %c0_i32, %c0_i32_0 : i32, i32
  }
  func.func @transform_6(%arg0: i32, %arg1: i32) -> (i32, i32) {
    %c0_i32 = arith.constant 0 : i32
    %c0_i32_0 = arith.constant 0 : i32
    %c0_i32_1 = arith.constant 0 : i32
    return %c0_i32, %c0_i32_0 : i32, i32
  }
  func.func @transform_7(%arg0: i32, %arg1: i32) -> (i32, i32) {
    %c0_i32 = arith.constant 0 : i32
    %c0_i32_0 = arith.constant 0 : i32
    %c0_i32_1 = arith.constant 0 : i32
    return %c0_i32, %c0_i32_0 : i32, i32
  }
  func.func @transform_8(%arg0: i32, %arg1: i32) -> (i32, i32, i32) {
    %c0_i32 = arith.constant 0 : i32
    %c0_i32_0 = arith.constant 0 : i32
    return %arg0, %c0_i32, %arg1 : i32, i32, i32
  }
}

</mosaic_0001>

<bundles_post_ra>
// kernel: tpu_custom_call.1
= control target key start
LH: loop header
LB: loop body
LE: loop exit
PB: predicated region body
PF: predicated region fallthrough
CT: control target
= control target key end

     0   :  { %s1231_s0 = inlined_call_operand.hbm [shape: f32[2,16,64], index: 0, kind: input, shape index: {}]   ;;  %s1232_s1 = inlined_call_operand.vmem [shape: bf16[2,16], index: 1, kind: input, shape index: {}]   ;;  %s1233_s2 = inlined_call_operand.vmem [shape: f32[2,1], index: 2, kind: input, shape index: {}]   ;;  %s1234_s3 = inlined_call_operand.vmem [shape: bf16[2,16], index: 3, kind: input, shape index: {}]   ;;  %s1235_s4 = inlined_call_operand.vmem [shape: f32[2,1], index: 4, kind: input, shape index: {}]   ;;  %s1236_s5 = inlined_call_operand.vmem [shape: bf16[16,16], index: 5, kind: input, shape index: {}]   ;;  %s1237_s6 = inlined_call_operand.vmem [shape: f32[16,1], index: 6, kind: input, shape index: {}]   ;;  %s1238_s7 = inlined_call_operand.<no memory space> [shape: f32[1,1], index: 7, kind: input, shape index: {}]   ;;  %s1239_s8 = inlined_call_operand.hbm [shape: f32[2,16,64], index: 8, kind: output, shape index: {}]  }
   0x1   :  { %13 = sst [smem:[#allocation7]] %s1238_s7 }
   0x2   :  { %14 = vsyncpa [#allocation9], 0 }
   0x3   :  { %16 = vsyncpa [#allocation9 + $0x1], 0 }
   0x4   :  { %17 = vsyncpa [#allocation10], 0 }
   0x5   :  { %19 = vsyncpa [#allocation10 + $0x1], 0  ;;  %s1048_s29 = smov 0   ;;  %s1050_s30 = smov 0  }
   0x6   :  { %s1052_s9 = smov 0   ;;  %s1054_s10 = smov 0  }
   0x7   :  { %s1056_s11 = smov 0   ;;  %s1058_s12 = smov 0  }
   0x8 LB: > { %1242 = sst [smem:[#allocation14_spill]] %s987_s11  ;;  %s751_s7 = sadd.s32 4294967295, %s991_s12   ;;  %s991_s12 = sphi %s1058_s12, %s25_s12   ;;  %s987_s11 = sphi %s1056_s11, %s1249_s11   ;;  %s983_s10 = sphi %s1054_s10, %s1248_s10   ;;  %s979_s9 = sphi %s1052_s9, %s1252_s9   ;;  %s975_s30 = sphi %s1050_s30, %s1251_s30   ;;  %s971_s29 = sphi %s1048_s29, %s1250_s29  }
   0x9   : > { %s752_s13 = sadd.s32 4294967294, %s991_s12   ;;  %s37_s14 = sadd.s32 1, %s987_s11 }
   0xa   : > { %s44_s15 = sadd.s32 1, %s979_s9  ;;  %p39_p0 = scmp.ge.s32.totalorder %s37_s14, 2 }
   0xb   : > { %p51_p1 = scmp.ne.s32.totalorder %s979_s9, %s975_s30  ;;  %p52_p2 = scmp.eq.s32.totalorder %s991_s12, 0 }
   0xc   : > { %p57_p3 = scmp.ne.s32.totalorder %s975_s30, %s971_s29  ;;  %s1254_s14 = smov (%p39_p0, %s37_s14), 0 }
   0xd   : > { %1243 = sst [smem:[#allocation15_spill]] %s1254_s14  ;;  %p1089_p4 = por %p52_p2, %p51_p1 }
   0xe   : > { %p58_p5 = scmp.eq.s32.totalorder %s751_s7, 0  ;;  %s41_s17 = ssub.s32 %s987_s11, %s1254_s14 }
   0xf   : > { %p230_p6 = scmp.eq.s32.totalorder %s751_s7, 1  ;;  %p42_p7 = scmp.eq.s32.totalorder %s41_s17, 0 }
  0x10   : > { %p1095_p8 = por %p58_p5, %p57_p3  ;;  %p236_p10 = scmp.eq.s32.totalorder %s752_s13, 1 }
  0x11   : > { %p1099_p9 = por %p230_p6, %p51_p1  ;;  %p754_p12 = scmp.ge.s32.totalorder %s991_s12, 2 }
  0x12   : > { %s1104_s20 = scalar_select %p42_p7, %s979_s9, %s44_s15  }
  0x13   : > { %p1106_p11 = por %p236_p10, %p57_p3  ;;  %p799_p13 = scmp.lt.s32.totalorder %s991_s12, 2 }
  0x14   : > { %s277_s22 = sand.u32 1, %s979_s9   ;;  %s782_s24 = sshll.u32 %s987_s11, 4 }
  0x15   : > { %s755_s23 = sshll.u32 %s277_s22, 4  ;;  %s286_s27 = scalar_lea.hbm %s1231_s0, %s782_s24 }
  0x16   : > { %s281_s28 = scalar_lea.vmem [#allocation8], %s755_s23  ;;  %s287_s17 = sshll.u32 %s286_s27, 4  ;;  %s288_s17 = int_to_ptr.hbm [resolvable:$true] %s287_s17 }
  0x17   : > { %s289_s7 = sshll.u32 %s281_s28, 4  ;;  %p792_p0 = pnand %p799_p13, %p1089_p4  ;;  %s290_s7 = int_to_ptr.vmem [resolvable:$true] %s289_s7 }
  0x18   : > { %p758_p1 = scmp.ge.s32.totalorder %s991_s12, 1  ;;  %s278_s13 = scalar_lea.sflag [#allocation9], %s277_s22 }
  0x19   : > { %s993_s15 = smov 128   ;;  %s994_s14 = smov 8  }
  0x1a   : > { %794 = dma.hbm_to_vmem [thread:$0]  (!%p792_p0), %s288_s17, 256, %s290_s7, %s278_s13, %s993_s15, %s993_s15, %s994_s14  }
  0x1b   : > { %p297_p2 = scmp.lt.s32.totalorder %s991_s12, 3 }
  0x1d   : > { %p298_p3 = pnand %p758_p1, %p297_p2 }
  0x1e   : > { %s1122_s11 = sand.u32 (!%p298_p3), 1, %s975_s30  }
  0x1f   : > { %301 = sbr.rel (%p298_p3) target bundleno = 748 (0x2ec), region = 52  ;;  %s759_s23 = sshll.u32 (!%p298_p3), %s1122_s11, 4 }
  0x20   : > { %s304_s24 = scalar_lea.sflag (!%p298_p3), [#allocation9], %s1122_s11  ;;  %s307_s16 = scalar_lea.vmem (!%p298_p3), [#allocation8], %s759_s23 }
  0x24   : > { %962 = dma.done.wait (%p1095_p8), %s304_s24, 256  }
  0x25   : > { %964 = vsyncadd (%p1095_p8), %s304_s24, 4294967040  ;;  %v995_v0 = vmov 0   ;;  %v1132_v1 = vld [vmem:[%s307_s16] sm:$0xff]  ;;  %v1134_v2 = vld [vmem:[%s307_s16 + $0x8] sm:$0xff]  ;;  %vm356_vm0 = vcmask 130048   ;;  %vm410_vm1 = vcmask 516096  }
  0x26   : > { %856 = vset.pattern.permute.xlu0 %v995_v0  ;;  %858 = vset.pattern.permute.xlu2 %v995_v0  ;;  %v348_v3 = vpack.c.bf16 %v1134_v2, %v1132_v1  ;;  %v350_v4 = vld [vmem:[%s1235_s4] sm:$0x3]  ;;  %v996_v9 = vmov -inf   ;;  %v997_v10 = vmov 0.0   ;;  %v376_v11 = vld [vmem:[%s1237_s6 + $0x8] sm:$0xff]  ;;  %vm483_vm2 = vcmask 1040384  }
  0x27   : > { %v783_v5 = vld [vmem:[%s1236_s5] sm:$0xff]  ;;  %353 = vperm.xlu0 %856, %v350_v4   ;;  %446 = vst.msk [vmem:[#allocation4] sm:$0x1] %vm410_vm1, %v996_v9  ;;  %384 = vperm.xlu2 %858, %v376_v11   ;;  %vm414_vm3 = vcmask 519168   ;;  %vm470_vm4 = vcmask 15360   ;;  %vm448_vm5 = vcmask 523264  }
  0x28   : > { %367 = vmatpush.bf16.msra.mxu0 %v348_v3  ;;  %402 = vmatpush.bf16.msra.mxu2 %v348_v3  ;;  %v349_v6 = vld [vmem:[%s1234_s3] sm:$0x1]  ;;  %447 = vst.msk [vmem:[#allocation5] sm:$0x1] %vm410_vm1, %v997_v10  ;;  %s641_s22 = sld [smem:[#allocation7]]  ;;  %s785_s25 = sshll.u32 %s983_s10, 4 }
  0x29   : > { %v421_v7 = vld [vmem:[%s1233_s2] sm:$0x3]  ;;  %449 = vst.msk [vmem:[#allocation6] sm:$0xff] %vm448_vm5, %v997_v10  ;;  %s664_s27 = scalar_lea.hbm %s1239_s8, %s785_s25  ;;  %s340_s28 = scalar_lea.vmem [#allocation11], %s759_s23 }
  0x2a   : > { %v417_v8 = vld [vmem:[%s1232_s1] sm:$0x1]  ;;  %450 = vst.msk [vmem:[#allocation6 + $0x8] sm:$0xff] %vm448_vm5, %v997_v10  ;;  %s665_s7 = sshll.u32 %s340_s28, 4  ;;  %s667_s17 = sshll.u32 %s664_s27, 4  ;;  %s666_s7 = int_to_ptr.vmem [resolvable:$true] %s665_s7  ;;  %s668_s17 = int_to_ptr.hbm [resolvable:$true] %s667_s17 }
  0x2b   : > { %761 = vmatmul.msk.bf16.vlgmr.msra.gmra.mxu0 %vm356_vm0, %v349_v6  ;;  %766 = vmatmul.msk.bf16.vlgmr.msra.gmra.mxu2 %vm356_vm0, %v783_v5  ;;  %v375_v26 = vld [vmem:[%s1237_s6] sm:$0xff]  ;;  %s652_s10 = scalar_lea.sflag [#allocation10], %s1122_s11  ;;  %s923_s13 = sshra.s32 %s668_s17, 4  ;;  %s924_s13 = int_to_ptr.hbm [resolvable:$true] %s923_s13 }
  0x2c   : > { %438 = vmatpush.bf16.msrb.mxu2 %v348_v3  ;;  %s925_s15 = scalar_lea.hbm %s924_s13, 16  ;;  %s929_s16 = scalar_lea.hbm %s1239_s8, 32 }
  0x2d   : > { %p926_p4 = scmp.ne.s32.totalorder %s924_s13, %s925_s15  ;;  %p930_p7 = scmp.lt.s32.totalorder %s924_s13, %s1239_s8 }
  0x2e   : > { %v516_v3 = vld [vmem:[#allocation4] sm:$0x1]  ;;  %p931_p8 = scmp.lt.s32.totalorder %s929_s16, %s925_s15 }
  0x2f   : > { %424 = vperm.xlu0 %856, %v421_v7   ;;  %p927_p5 = pnand %p926_p4, %p1099_p9 }
  0x30   : > { %p932_p10 = por %p931_p8, %p930_p7 }
  0x31   : > { %p928_p6 = pneg %p927_p5 }
  0x33   : > { %p933_p13 = pnand %p932_p10, %p928_p6 }
  0x3b   : > { %767 = vmatmul.msk.bf16.vlgmr.msrb.gmra.mxu2 %vm356_vm0, %v417_v8 }
  0x81   : > { %v385_v27 = vpop.permute.xlu2 %384 }
  0x99   : > { %v354_v12 = vpop.permute.xlu0 %353 }
  0xa1   : > { %v425_v20 = vpop.permute.xlu0 %424 }
  0xa8   : > { %v369_v13 = vpop.f32.mrf.mxu0 }
  0xa9   : > { %v370_v14 = vadd.f32 %v369_v13, %v354_v12 }
  0xab   : > { %v409_v15 = vpack.c.bf16 %v370_v14, %v370_v14 }
  0xad   : > { %411 = vst.msk [vmem:[#allocation2] sm:$0x1] %vm410_vm1, %v409_v15 }
  0xae   : > { %v404_v16 = vpop.f32.mrf.mxu2 }
  0xb0   : > { %v371_v17 = vpop.f32.mrf.mxu0 }
  0xb4   : > { %v451_v18 = vld [vmem:[#allocation2] sm:$0x1] }
  0xb5   : > { %454 = vxpose.xlu1.c.b16.start.end [1/1] (short) (narrow) %v451_v18, 64 }
  0xb6   : > { %v406_v19 = vpop.f32.mrf.mxu2 }
  0xb7   : > { %v407_v28 = vadd.f32 %v406_v19, %v385_v27 }
  0xb9   : > { %v413_v29 = vpack.c.bf16 %v407_v28, %v407_v28 }
  0xbb   : > { %416 = vst.msk [vmem:[#allocation3 + $0x4] sm:$0xf] %vm414_vm3, %v413_v29 }
  0xbe   : > { %v440_v21 = vpop.f32.mrf.mxu2 }
  0xbf   : > { %v441_v22 = vadd.f32 %v440_v21, %v425_v20 }
  0xc1   : > { %v444_v23 = vpack.c.bf16 %v441_v22, %v441_v22 }
  0xc3   : > { %v485_v24 = vsel %vm483_vm2, %v444_v23, 0 }
  0xc4   : > { %494 = vmatpush.bf16.msra.mxu1 %v485_v24  ;;  %786 = vmatpush.bf16.msra.mxu3 %v485_v24 }
  0xc6   : > { %v442_v25 = vpop.f32.mrf.mxu2 }
 0x108   : > { %857 = vset.pattern.permute.xlu1 %v995_v0 }
 0x13f   : > { %379 = vperm.xlu1 %857, %v375_v26  }
 0x161   : > { %v462_v30 = vpop.trf.xlu1 }
 0x162   : > { %768 = vmatmul.msk.bf16.vlgmr.msra.gmra.mxu1 %vm470_vm4, %v462_v30 }
 0x171   : > { %v463_v31 = vpop.trf.xlu1 }
 0x172   : > { %769 = vmatmul.msk.bf16.gmra.mxu1 %vm470_vm4, %v463_v31 }
 0x181   : > { %v464_v32 = vpop.trf.xlu1 }
 0x182   : > { %770 = vmatmul.msk.bf16.vlgmr.msra.gmra.mxu3 %vm470_vm4, %v464_v32 }
 0x191   : > { %v465_v33 = vpop.trf.xlu1 }
 0x192   : > { %771 = vmatmul.msk.bf16.gmra.mxu3 %vm470_vm4, %v465_v33 }
 0x1b1   : > { %v380_v34 = vpop.permute.xlu1 %379 }
 0x1b2   : > { %v405_v35 = vadd.f32 %v404_v16, %v380_v34 }
 0x1b4   : > { %v412_v36 = vpack.c.bf16 %v405_v35, %v405_v35 }
 0x1b6   : > { %415 = vst.msk [vmem:[#allocation3] sm:$0xf] %vm414_vm3, %v412_v36 }
 0x1df   : > { %v496_v37 = vpop.f32.mrf.mxu1 }
 0x1e0   : > { %v517_v50 = vsel %vm448_vm5, %v496_v37, -inf }
 0x1e7   : > { %v498_v39 = vpop.f32.mrf.mxu1 }
 0x1e8   : > { %v518_v45 = vsel %vm448_vm5, %v498_v39, -inf }
 0x1ef   : > { %v501_v41 = vpop.f32.mrf.mxu1 }
 0x1f0   : > { %v519_v51 = vsel %vm448_vm5, %v501_v41, -inf }
 0x1f7   : > { %v503_v44 = vpop.f32.mrf.mxu1 }
 0x1f8   : > { %v520_v52 = vsel %vm448_vm5, %v503_v44, -inf }
 0x205   : > { %v506_v38 = vpop.f32.mrf.mxu3 }
 0x206   : > { %v521_v46 = vsel %vm448_vm5, %v506_v38, -inf }
 0x207   : > { %v522_v54 = vmax.f32 %v517_v50, %v521_v46 }
 0x20d   : > { %v508_v40 = vpop.f32.mrf.mxu3 }
 0x20e   : > { %v523_v43 = vsel %vm448_vm5, %v508_v40, -inf }
 0x20f   : > { %v524_v48 = vmax.f32 %v518_v45, %v523_v43 }
 0x211   : > { %v529_v57 = vmax.f32 %v522_v54, %v524_v48 }
 0x215   : > { %v511_v42 = vpop.f32.mrf.mxu3 }
 0x216   : > { %v525_v47 = vsel %vm448_vm5, %v511_v42, -inf }
 0x217   : > { %v526_v55 = vmax.f32 %v519_v51, %v525_v47  ;;  %v784_v47 = vld [vmem:[#allocation3] sm:$0xff] }
 0x21d   : > { %v513_v49 = vpop.f32.mrf.mxu3 }
 0x21e   : > { %v527_v53 = vsel %vm448_vm5, %v513_v49, -inf }
 0x21f   : > { %v528_v56 = vmax.f32 %v520_v52, %v527_v53 }
 0x221   : > { %v530_v58 = vmax.f32 %v526_v55, %v528_v56 }
 0x223   : > { %v531_v59 = vmax.f32 %v529_v57, %v530_v58  ;;  %v569_v58 = vld [vmem:[#allocation5] sm:$0x1] }
 0x225   : > { %v532_v60 = vrot.slane %v531_v59, 4 }
 0x227   : > { %v533_v61 = vmax.f32 %v531_v59, %v532_v60 }
 0x229   : > { %v534_v62 = vrot.slane %v533_v61, 2 }
 0x22b   : > { %v535_v63 = vmax.f32 %v533_v61, %v534_v62 }
 0x22d   : > { %v536_v0 = vrot.slane %v535_v63, 1 }
 0x22f   : > { %v537_v4 = vmax.f32 %v535_v63, %v536_v0  ;;  %v594_v0 = vld [vmem:[#allocation6] sm:$0xff] }
 0x231   : > { %v538_v5 = vmax.f32 %v516_v3, %v537_v4 }
 0x233   : > { %v543_v6 = vperm.slane %v538_v5, 0  ;;  %631 = vst.msk [vmem:[#allocation4] sm:$0x1] %vm410_vm1, %v538_v5  ;;  %v539_v45 = vsub.f32 %v516_v3, %v538_v5 }
 0x235   : > { %v552_v7 = vsub.f32 %v513_v49, %v543_v6  ;;  %v551_v8 = vsub.f32 %v511_v42, %v543_v6  ;;  %v549_v9 = vsub.f32 %v506_v38, %v543_v6  ;;  %v550_v10 = vsub.f32 %v508_v40, %v543_v6 }
 0x236   : > { %v547_v11 = vsub.f32 %v501_v41, %v543_v6  ;;  %v548_v12 = vsub.f32 %v503_v44, %v543_v6  ;;  %v545_v16 = vsub.f32 %v496_v37, %v543_v6  ;;  %v546_v18 = vsub.f32 %v498_v39, %v543_v6 }
 0x237   : > { %v567_v13 = vmul.f32 1.442695, %v552_v7  ;;  %v565_v14 = vmul.f32 1.442695, %v551_v8  ;;  %v561_v15 = vmul.f32 1.442695, %v549_v9 }
 0x238   : > { %v563_v17 = vmul.f32 1.442695, %v550_v10  ;;  %v557_v19 = vmul.f32 1.442695, %v547_v11  ;;  %v559_v20 = vmul.f32 1.442695, %v548_v12 }
 0x239   : > { %859 = vpow2.f32 %v567_v13  ;;  %v553_v21 = vmul.f32 1.442695, %v545_v16  ;;  %v555_v22 = vmul.f32 1.442695, %v546_v18  ;;  %v540_v51 = vmul.f32 1.442695, %v539_v45 }
 0x23a   : > { %861 = vpow2.f32 %v565_v14  ;;  %v595_v7 = vld [vmem:[#allocation6 + $0x8] sm:$0xff]  ;;  %v642_v14 = vstv %s641_s22 }
 0x23b   : > { %863 = vpow2.f32 %v561_v15 }
 0x23c   : > { %865 = vpow2.f32 %v563_v17 }
 0x23d   : > { %867 = vpow2.f32 %v557_v19 }
 0x23e   : > { %869 = vpow2.f32 %v559_v20 }
 0x23f   : > { %v860_v23 = vpop.eup %859  ;;  %871 = vpow2.f32 %v553_v21 }
 0x240   : > { %v862_v24 = vpop.eup %861  ;;  %873 = vpow2.f32 %v555_v22  ;;  %v584_v50 = vsel %vm448_vm5, %v860_v23, 0.0 }
 0x241   : > { %v864_v25 = vpop.eup %863  ;;  %v604_v26 = vpack.c.bf16 %v860_v23, %v862_v24  ;;  %v582_v48 = vsel %vm448_vm5, %v862_v24, 0.0  ;;  %875 = vpow2.f32 %v540_v51 }
 0x242   : > { %v866_v27 = vpop.eup %865  ;;  %v578_v41 = vsel %vm448_vm5, %v864_v25, 0.0 }
 0x243   : > { %v868_v28 = vpop.eup %867  ;;  %617 = vmatpush.bf16.msrb.mxu0 %v604_v26  ;;  %v603_v31 = vpack.c.bf16 %v866_v27, %v864_v25  ;;  %v580_v44 = vsel %vm448_vm5, %v866_v27, 0.0 }
 0x244   : > { %v870_v29 = vpop.eup %869  ;;  %v574_v36 = vsel %vm448_vm5, %v868_v28, 0.0 }
 0x245   : > { %v872_v30 = vpop.eup %871  ;;  %v602_v37 = vpack.c.bf16 %v870_v29, %v868_v28  ;;  %v576_v39 = vsel %vm448_vm5, %v870_v29, 0.0 }
 0x246   : > { %v874_v32 = vpop.eup %873  ;;  %v571_v33 = vsel %vm448_vm5, %v872_v30, 0.0 }
 0x247   : > { %618 = vmatpush.bf16.msrb.mxu0 %v603_v31  ;;  %v572_v34 = vsel %vm448_vm5, %v874_v32, 0.0  ;;  %v601_v42 = vpack.c.bf16 %v874_v32, %v872_v30  ;;  %v876_v57 = vpop.eup %875 }
 0x248   : > { %v573_v35 = vadd.f32 %v572_v34, %v571_v33  ;;  %v570_v61 = vmul.f32 %v876_v57, %v569_v58  ;;  %v597_v63 = vperm.slane %v876_v57, 0 }
 0x24a   : > { %v575_v38 = vadd.f32 %v574_v36, %v573_v35  ;;  %v599_v4 = vmul.f32 %v597_v63, %v594_v0  ;;  %v600_v9 = vmul.f32 %v597_v63, %v595_v7 }
 0x24b   : > { %619 = vmatpush.bf16.msrb.mxu0 %v602_v37 }
 0x24c   : > { %v577_v40 = vadd.f32 %v576_v39, %v575_v38 }
 0x24e   : > { %v579_v43 = vadd.f32 %v578_v41, %v577_v40 }
 0x24f   : > { %620 = vmatpush.bf16.msrb.mxu0 %v601_v42 }
 0x250   : > { %v581_v46 = vadd.f32 %v580_v44, %v579_v43 }
 0x252   : > { %v583_v49 = vadd.f32 %v582_v48, %v581_v46  ;;  %776 = vmatmul.msk.bf16.vlgmr.msrb.gmra.mxu0 %vm448_vm5, %v784_v47 }
 0x254   : > { %v585_v52 = vadd.f32 %v584_v50, %v583_v49 }
 0x256   : > { %v586_v53 = vrot.slane %v585_v52, 4 }
 0x258   : > { %v587_v54 = vadd.f32 %v586_v53, %v585_v52 }
 0x25a   : > { %v588_v55 = vrot.slane %v587_v54, 2 }
 0x25c   : > { %v589_v56 = vadd.f32 %v588_v55, %v587_v54 }
 0x25e   : > { %v590_v59 = vrot.slane %v589_v56, 1 }
 0x260   : > { %v591_v60 = vadd.f32 %v590_v59, %v589_v56 }
 0x262   : > { %v592_v62 = vadd.f32 %v591_v60, %v570_v61 }
 0x264   : > { %593 = vst.msk [vmem:[#allocation5] sm:$0x1] %vm410_vm1, %v592_v62 }
 0x26b   : > { %v632_v3 = vld [vmem:[#allocation5] sm:$0x1] }
 0x26c   : > { %877 = vrcp.f32 %v632_v3 }
 0x272   : > { %v878_v8 = vpop.eup %877 }
 0x273   : > { %v637_v12 = vperm.slane %v878_v8, 0 }
 0x2cf   : > { %v622_v5 = vpop.f32.mrf.mxu0 }
 0x2d0   : > { %v627_v6 = vadd.f32 %v622_v5, %v599_v4 }
 0x2d2   : > { %629 = vst.msk [vmem:[#allocation6] sm:$0xff] %vm448_vm5, %v627_v6 }
 0x2d7   : > { %v624_v10 = vpop.f32.mrf.mxu0 }
 0x2d8   : > { %v628_v11 = vadd.f32 %v624_v10, %v600_v9 }
 0x2d9   : > { %v634_v13 = vld [vmem:[#allocation6] sm:$0xff] }
 0x2da   : > { %630 = vst.msk [vmem:[#allocation6 + $0x8] sm:$0xff] %vm448_vm5, %v628_v11  ;;  %v639_v15 = vmul.f32 %v637_v12, %v634_v13 }
 0x2dc   : > { %v643_v16 = vmul.f32 %v642_v14, %v639_v15 }
 0x2de   : > { %v647_v17 = vadd.f32 %v643_v16, %v1132_v1 }
 0x2e0   : > { %649 = vst.msk [vmem:[%s340_s28] sm:$0xff] %vm448_vm5, %v647_v17 }
 0x2e1   : > { %v635_v18 = vld [vmem:[#allocation6 + $0x8] sm:$0xff] }
 0x2e2   : > { %v640_v19 = vmul.f32 %v637_v12, %v635_v18 }
 0x2e4   : > { %v644_v20 = vmul.f32 %v642_v14, %v640_v19 }
 0x2e6   : > { %v648_v21 = vadd.f32 %v644_v20, %v1134_v2 }
 0x2e8   : > { %650 = vst.msk [vmem:[%s340_s28 + $0x8] sm:$0xff] %vm448_vm5, %v648_v21 }
 0x2e9   : > { %936 = shalt.err (!%p933_p13)
}
 0x2ea   : > { %s998_s11 = smov 128   ;;  %s999_s25 = smov 8  }
 0x2eb   : > { %789 = dma.vmem_to_hbm [thread:$0]  (%p1099_p9), %s666_s7, 256, %s668_s17, %s652_s10, %s998_s11, %s998_s11, %s999_s25  }
 0x2ec PF: > { %s682_s26 = sand.u32 1, %s971_s29   ;;  %p796_p0 = pnand %p754_p12, %p1106_p11 }
 0x2ed   : > { %s683_s18 = scalar_lea.sflag [#allocation10], %s682_s26 }
 0x2ee   : > { %p797_p1 = pneg %p796_p0 }
 0x2f0   : > { %966 = dma.done.wait (%p797_p1), %s683_s18, 256  }
 0x2f1   : > { %968 = vsyncadd (%p797_p1), %s683_s18, 4294967040  ;;  %s25_s12 = sadd.s32 1, %s991_s12   ;;  %s1248_s10 = sld [smem:[#allocation14_spill]] }
 0x2f2   : > { %p22_p2 = scmp.ge.s32.totalorder %s25_s12, 4   ;;  %s1249_s11 = sld [smem:[#allocation15_spill]] }
 0x2f3   : > { %s1250_s29 = smov %s975_s30  ;;  %s1251_s30 = smov %s979_s9 }
 0x2f4   : > { %s1252_s9 = smov %s1104_s20  ;;  %24 = sbr.rel (!%p22_p2) target bundleno = 8 (0x8), region = 101 }
 0x2f9   :  { %689 = vsyncpa [#allocation9], 1 }
 0x2fa   :  { %691 = vsyncpa [#allocation9 + $0x1], 1 }
 0x2fb   :  { %692 = vsyncpa [#allocation10], 1 }
 0x2fc   :  { %694 = vsyncpa [#allocation10 + $0x1], 1 }

</bundles_post_ra>
